<compile_context>
chip_gen: v7x
topology: tpu7x:2x2x1
jax: 0.10.0
libtpu: 0.0.40
codegen_flags: <defaults>
</compile_context>

<pallas_src>
import functools

import jax
import jax.numpy as jnp
from jax.experimental import pallas as pl
from jax.experimental.pallas import tpu as pltpu


EPS = 1e-6


def _layernorm_rowmajor_kernel(x_ref, alpha_ref, bias_ref, o_ref):
    """Plain path: one LayerNorm row per tile row. x_ref: (TR, F)."""
    x = x_ref[...].astype(jnp.float32)
    n = x.shape[-1]
    # Two-pass mean/variance (numerically safer than sum/sumsq).
    mean = jnp.mean(x, axis=-1, keepdims=True)
    diff = x - mean
    # Unbiased variance (Bessel), matching torch.std.
    var = jnp.sum(diff * diff, axis=-1, keepdims=True) * (1.0 / float(n - 1))
    std = jnp.sqrt(var)
    inv = pl.reciprocal(std + jnp.float32(EPS), approx=False)
    alpha = alpha_ref[...]  # (1, F) float32
    bias = bias_ref[...]    # (1, F) float32
    o_ref[...] = (alpha * (diff * inv) + bias).astype(o_ref.dtype)


def _layernorm_packed_kernel(x_ref, p_ref, alpha_ref, bias_ref, o_ref, *, seg):
    """Lane-packed path: k = 128 // seg LayerNorm rows per 128-lane slab.

    x_ref: (TR, 128); p_ref: (128, 128) block-diagonal ones (f32). The two
    matmuls compute a segmented sum over each seg-wide group of lanes and
    broadcast it back, using the otherwise-idle MXU.
    """
    x = x_ref[...].astype(jnp.float32)
    p = p_ref[...]
    inv_n = jnp.float32(1.0 / float(seg))
    inv_nm1 = jnp.float32(1.0 / float(seg - 1))
    mean = jnp.dot(x, p, preferred_element_type=jnp.float32) * inv_n
    diff = x - mean
    var = jnp.dot(diff * diff, p, preferred_element_type=jnp.float32) * inv_nm1
    std = jnp.sqrt(var)
    inv = pl.reciprocal(std + jnp.float32(EPS), approx=False)
    alpha = alpha_ref[...]  # (1, 128) float32, alpha tiled k times
    bias = bias_ref[...]
    o_ref[...] = (alpha * (diff * inv) + bias).astype(o_ref.dtype)


def _cdiv(a, b):
    return (a + b - 1) // b


def _round_up(a, b):
    return ((a + b - 1) // b) * b


def decoder_forward(x, mask, alpha, bias, layers=()):
    """Decoder.forward: apply layers (empty here) then LayerNormalization.

    x: (B, S, F). mask is accepted for API parity; it is only consumed by the
    (absent) decoder blocks.
    """
    del mask  # only used by the opaque `layers`, which are empty here
    for layer in layers:  # identity pass-through for the empty stack
        x = layer(x)

    B, S, F = x.shape
    rows = B * S
    alpha_f = alpha.reshape(-1).astype(jnp.float32)
    bias_f = bias.reshape(-1).astype(jnp.float32)

    # ---- layout: lane-pack when F is small so stores are lane-dense --------
    pack = (F > 1) and (F < 128) and (128 % F == 0) and (rows % (128 // F) == 0)
    if pack:
        k = 128 // F
        W = 128
        rows_p = rows // k
        x2d = x.reshape(rows_p, W)                  # row-major: k rows / slab
        alpha2d = jnp.tile(alpha_f, (k,)).reshape(1, W)
        bias2d = jnp.tile(bias_f, (k,)).reshape(1, W)
        seg_ids = jnp.arange(W, dtype=jnp.int32) // F
        p_mat = (seg_ids[:, None] == seg_ids[None, :]).astype(jnp.float32)
    else:
        W = F
        rows_p = rows
        x2d = x.reshape(rows_p, W)
        alpha2d = alpha_f.reshape(1, W)
        bias2d = bias_f.reshape(1, W)
        p_mat = None

    # ---- tile sizing --------------------------------------------------------
    item = jnp.dtype(x.dtype).itemsize
    buf_budget = 16 << 20  # pipeline-buffer budget; roofline saturates well below
    # double-buffered in + double-buffered out + ~4 f32 temporaries per element
    per_row_bytes = W * (4 * item + 16)
    tr_cap = max(8, min(2048, (buf_budget // per_row_bytes) // 8 * 8))

    if rows_p <= 8:
        TR = rows_p  # block equals full row extent (single grid step)
    else:
        # Cap at ~half the rows (rounded to 8) so the grid has >= 2 steps and
        # v7x's two TensorCores both get work ("parallel" row axis).
        half = _round_up(_cdiv(rows_p, 2), 8)
        TR = max(8, min(tr_cap, half))
    grid0 = _cdiv(rows_p, TR)  # ragged last block: OOB writes are masked

    # Right-sized scoped-VMEM request, clamped to fit v7x's 64 MiB/TC.
    vmem_need = (4 * TR * W * item          # double-buffered in + out tiles
                 + 4 * TR * W * 4           # f32 temporaries
                 + (2 * 128 * 128 * 4 if pack else 0)
                 + (1 << 20))               # params + compiler scratch slack
    vmem_limit = int(min(48 << 20, max(16 << 20, int(vmem_need * 1.25))))

    ew_flops = 8 * rows_p * W
    mm_flops = (4 * rows_p * W * W) if pack else 0
    cost = pl.CostEstimate(
        flops=int(ew_flops + mm_flops),
        transcendentals=int(2 * rows),
        bytes_accessed=int(2 * rows_p * W * item + 4 * W * 4),
    )

    if pack:
        kernel = functools.partial(_layernorm_packed_kernel, seg=F)
        in_specs = [
            pl.BlockSpec((TR, W), lambda i: (i, 0)),
            pl.BlockSpec((128, 128), lambda i: (0, 0)),
            pl.BlockSpec((1, W), lambda i: (0, 0)),
            pl.BlockSpec((1, W), lambda i: (0, 0)),
        ]
        operands = (x2d, p_mat, alpha2d, bias2d)
    else:
        kernel = _layernorm_rowmajor_kernel
        in_specs = [
            pl.BlockSpec((TR, W), lambda i: (i, 0)),
            pl.BlockSpec((1, W), lambda i: (0, 0)),
            pl.BlockSpec((1, W), lambda i: (0, 0)),
        ]
        operands = (x2d, alpha2d, bias2d)

    out2d = pl.pallas_call(
        kernel,
        out_shape=jax.ShapeDtypeStruct((rows_p, W), x.dtype),
        grid_spec=pltpu.PrefetchScalarGridSpec(
            num_scalar_prefetch=0,
            grid=(grid0,),
            in_specs=in_specs,
            out_specs=pl.BlockSpec((TR, W), lambda i: (i, 0)),
        ),
        compiler_params=pltpu.CompilerParams(
            dimension_semantics=("parallel",),  # megacore-shards rows on v7x
            vmem_limit_bytes=vmem_limit,
        ),
        cost_estimate=cost,
    )(*operands)

    # No pad, no slice: rows_p * W == B * S * F and packing is row-major.
    return out2d.reshape(B, S, F)


def _reference(x, alpha, bias):
    xf = x.astype(jnp.float32)
    mean = jnp.mean(xf, axis=-1, keepdims=True)
    std = jnp.std(xf, axis=-1, keepdims=True, ddof=1)  # unbiased, like torch
    return (alpha * (xf - mean) / (std + EPS) + bias).astype(x.dtype)


if __name__ == "__main__":
    key = jax.random.PRNGKey(0)
    B, S, F = 2, 8, 32

    kx, _ = jax.random.split(key)
    x = jax.random.normal(kx, (B, S, F), dtype=jnp.float32)
    # Causal mask (consumed only by decoder blocks, kept for signature parity).
    mask = jnp.tril(jnp.ones((1, 1, S, S), dtype=jnp.float32))

    # LayerNormalization parameters, matching nn.Parameter defaults:
    # alpha = ones(features), bias = zeros(features).
    alpha = jnp.ones((F,), dtype=jnp.float32)
    bias = jnp.zeros((F,), dtype=jnp.float32)

    out = decoder_forward(x, mask, alpha, bias)
    out = jax.block_until_ready(out)

    ref = _reference(x, alpha, bias)
    assert out.shape == (B, S, F)
    assert jnp.allclose(out, ref, atol=1e-5, rtol=1e-5), float(
        jnp.max(jnp.abs(out - ref))
    )
    print("KERNEL_OK")
</pallas_src>

<mosaic_0001>
module attributes {stable_mosaic.version = 11 : i64} {
  func.func @_layernorm_packed_kernel(%arg0: i32, %arg1: memref<4x128xf32, #tpu.memory_space<vmem>>, %arg2: memref<128x128xf32, #tpu.memory_space<vmem>>, %arg3: memref<1x128xf32, #tpu.memory_space<vmem>>, %arg4: memref<1x128xf32, #tpu.memory_space<vmem>>, %arg5: memref<4x128xf32, #tpu.memory_space<vmem>>) attributes {dimension_semantics = [#tpu.dimension_semantics<parallel>], iteration_bounds = array<i64: 1>, scalar_prefetch = 0 : i64, scratch_operands = 0 : i64, tpu.core_type = #tpu.core_type<tc>, window_params = [{transform_indices = @transform_0, window_bounds = array<i64: 4, 128>}, {pipeline_mode = #tpu.pipeline_mode<synchronous>, transform_indices = @transform_1, window_bounds = array<i64: 128, 128>}, {pipeline_mode = #tpu.pipeline_mode<synchronous>, transform_indices = @transform_2, window_bounds = array<i64: 1, 128>}, {pipeline_mode = #tpu.pipeline_mode<synchronous>, transform_indices = @transform_3, window_bounds = array<i64: 1, 128>}, {transform_indices = @transform_4, window_bounds = array<i64: 4, 128>}]} {
    %c0 = arith.constant 0 : index
    %c0_0 = arith.constant 0 : index
    %0 = vector.load %arg1[%c0, %c0_0] : memref<4x128xf32, #tpu.memory_space<vmem>>, vector<4x128xf32>
    %c0_1 = arith.constant 0 : index
    %c0_2 = arith.constant 0 : index
    %1 = vector.load %arg2[%c0_1, %c0_2] : memref<128x128xf32, #tpu.memory_space<vmem>>, vector<128x128xf32>
    %cst = arith.constant dense<0.000000e+00> : vector<4x128xf32>
    %2 = tpu.matmul %0, %1, %cst {dimension_numbers = #tpu.dot_dimension_numbers<[1], [0], [0], [1], [0, 0, 1, 1], [], []>} : vector<4x128xf32>, vector<128x128xf32>, vector<4x128xf32> -> vector<4x128xf32>
    %cst_3 = arith.constant 3.125000e-02 : f32
    %3 = vector.broadcast %cst_3 : f32 to vector<4x128xf32>
    %4 = arith.mulf %2, %3 : vector<4x128xf32>
    %5 = arith.subf %0, %4 : vector<4x128xf32>
    %6 = arith.mulf %5, %5 : vector<4x128xf32>
    %cst_4 = arith.constant dense<0.000000e+00> : vector<4x128xf32>
    %7 = tpu.matmul %6, %1, %cst_4 {dimension_numbers = #tpu.dot_dimension_numbers<[1], [0], [0], [1], [0, 0, 1, 1], [], []>} : vector<4x128xf32>, vector<128x128xf32>, vector<4x128xf32> -> vector<4x128xf32>
    %cst_5 = arith.constant 0.0322580636 : f32
    %8 = vector.broadcast %cst_5 : f32 to vector<4x128xf32>
    %9 = arith.mulf %7, %8 : vector<4x128xf32>
    %10 = math.sqrt %9 : vector<4x128xf32>
    %cst_6 = arith.constant 9.99999997E-7 : f32
    %11 = vector.broadcast %cst_6 : f32 to vector<4x128xf32>
    %12 = arith.addf %10, %11 : vector<4x128xf32>
    %13 = tpu.reciprocal %12 : vector<4x128xf32> -> vector<4x128xf32>
    %c0_7 = arith.constant 0 : index
    %c0_8 = arith.constant 0 : index
    %14 = vector.load %arg3[%c0_7, %c0_8] : memref<1x128xf32, #tpu.memory_space<vmem>>, vector<1x128xf32>
    %c0_9 = arith.constant 0 : index
    %c0_10 = arith.constant 0 : index
    %15 = vector.load %arg4[%c0_9, %c0_10] : memref<1x128xf32, #tpu.memory_space<vmem>>, vector<1x128xf32>
    %16 = arith.mulf %5, %13 : vector<4x128xf32>
    %17 = vector.broadcast %14 : vector<1x128xf32> to vector<4x128xf32>
    %18 = arith.mulf %17, %16 : vector<4x128xf32>
    %19 = vector.broadcast %15 : vector<1x128xf32> to vector<4x128xf32>
    %20 = arith.addf %18, %19 : vector<4x128xf32>
    %c0_11 = arith.constant 0 : index
    %c0_12 = arith.constant 0 : index
    %21 = vector.load %arg5[%c0_11, %c0_12] : memref<4x128xf32, #tpu.memory_space<vmem>>, vector<4x128xf32>
    tpu.vector_store %arg5[%c0_11, %c0_12], %20 {strides = array<i32>} : memref<4x128xf32, #tpu.memory_space<vmem>>, vector<4x128xf32>,
    return
  }
  func.func @transform_0(%arg0: i32) -> (i32, i32) {
    %c0_i32 = arith.constant 0 : i32
    %c0_i32_0 = arith.constant 0 : i32
    return %arg0, %c0_i32 : i32, i32
  }
  func.func @transform_1(%arg0: i32) -> (i32, i32) {
    %c0_i32 = arith.constant 0 : i32
    %c0_i32_0 = arith.constant 0 : i32
    %c0_i32_1 = arith.constant 0 : i32
    return %c0_i32, %c0_i32_0 : i32, i32
  }
  func.func @transform_2(%arg0: i32) -> (i32, i32) {
    %c0_i32 = arith.constant 0 : i32
    %c0_i32_0 = arith.constant 0 : i32
    %c0_i32_1 = arith.constant 0 : i32
    return %c0_i32, %c0_i32_0 : i32, i32
  }
  func.func @transform_3(%arg0: i32) -> (i32, i32) {
    %c0_i32 = arith.constant 0 : i32
    %c0_i32_0 = arith.constant 0 : i32
    %c0_i32_1 = arith.constant 0 : i32
    return %c0_i32, %c0_i32_0 : i32, i32
  }
  func.func @transform_4(%arg0: i32) -> (i32, i32) {
    %c0_i32 = arith.constant 0 : i32
    %c0_i32_0 = arith.constant 0 : i32
    return %arg0, %c0_i32 : i32, i32
  }
}

</mosaic_0001>

<bundles_post_ra>
// kernel: tpu_custom_call.1
= control target key start
LH: loop header
LB: loop body
LE: loop exit
PB: predicated region body
PF: predicated region fallthrough
CT: control target
= control target key end

     0   :  { %9 = vsyncpa [#allocation3], 0  ;;  %s568_s0 = inlined_call_operand.hbm [shape: f32[4,128], index: 0, kind: input, shape index: {}]   ;;  %s569_s1 = inlined_call_operand.hbm [shape: f32[128,128], index: 1, kind: input, shape index: {}]   ;;  %s570_s2 = inlined_call_operand.vmem [shape: f32[1,128], index: 2, kind: input, shape index: {}]   ;;  %s571_s3 = inlined_call_operand.vmem [shape: f32[1,128], index: 3, kind: input, shape index: {}]   ;;  %s572_s4 = inlined_call_operand.hbm [shape: f32[4,128], index: 4, kind: output, shape index: {}]  }
   0x1   :  { %10 = vsyncpa [#allocation6], 0 }
   0x2   :  { %11 = vsyncpa [#allocation4], 0  ;;  %s486_s15 = smov [#allocation2]   ;;  %s487_s17 = smov [#allocation5]  }
   0x3   :  { %s18_s16 = sshll.u32 %s486_s15, 4  ;;  %s27_s18 = sshll.u32 %s487_s17, 4  ;;  %s19_s16 = int_to_ptr.vmem [resolvable:$true] %s18_s16  ;;  %s519_s18 = int_to_ptr.vmem [resolvable:$true] %s27_s18 }
   0x4   :  { %s414_s21 = scalar_lea.hbm %s568_s0, 64 }
   0x5   :  { %p415_p0 = scmp.ne.s32.totalorder %s568_s0, %s414_s21  ;;  %p418_p1 = scmp.lt.u32.totalorder %s414_s21, %s568_s0 }
   0x7   :  { %p420_p2 = pnand %p418_p1, %p415_p0 }
   0x9   :  { %423 = shalt.err (!%p420_p2)
}
   0xa   :  { %s424_s26 = scalar_lea.vmem %s19_s16, 64  ;;  %p429_p4 = scmp.lt.s32.totalorder %s19_s16, %s19_s16 }
   0xb   :  { %p425_p3 = scmp.ne.s32.totalorder %s19_s16, %s424_s26  ;;  %p430_p5 = scmp.lt.s32.totalorder %s424_s26, %s424_s26 }
   0xd   :  { %p431_p6 = por %p430_p5, %p429_p4 }
   0xf   :  { %p432_p7 = pnand %p431_p6, %p425_p3 }
  0x11   :  { %435 = shalt.err (!%p432_p7)
}
  0x12   :  { %21 = dma.hbm_to_vmem [thread:$0]  %s568_s0, 64, %s19_s16, [#allocation3]  }
  0x13   :  { %s436_s5 = scalar_lea.hbm %s569_s1, 2048 }
  0x14   :  { %p437_p8 = scmp.ne.s32.totalorder %s569_s1, %s436_s5  ;;  %p440_p9 = scmp.lt.u32.totalorder %s436_s5, %s569_s1 }
  0x16   :  { %p442_p10 = pnand %p440_p9, %p437_p8 }
  0x18   :  { %445 = shalt.err (!%p442_p10)
}
  0x19   :  { %s446_s10 = scalar_lea.vmem %s519_s18, 2048  ;;  %p451_p12 = scmp.lt.s32.totalorder %s519_s18, %s519_s18 }
  0x1a   :  { %p447_p11 = scmp.ne.s32.totalorder %s519_s18, %s446_s10  ;;  %p452_p13 = scmp.lt.s32.totalorder %s446_s10, %s446_s10 }
  0x1c   :  { %p453_p0 = por %p452_p13, %p451_p12 }
  0x1e   :  { %p454_p1 = pnand %p453_p0, %p447_p11 }
  0x20   :  { %457 = shalt.err (!%p454_p1)
}
  0x21   :  { %s488_s0 = smov 128   ;;  %s489_s11 = smov 8  }
  0x22   :  { %33 = dma.hbm_to_vmem [thread:$0]  %s569_s1, 2048, %s519_s18, [#allocation6], %s488_s0, %s488_s0, %s489_s11  }
  0x23   :  { %480 = dma.done.wait [#allocation3], 64  }
  0x24   :  { %481 = vsyncadd [#allocation3], 4294967232 }
  0x25   :  { %482 = dma.done.wait [#allocation6], 2048  }
  0x26   :  { %483 = vsyncadd [#allocation6], 4294965248  ;;  %v490_v0 = vmov 0.0|0.0   ;;  %vm491_vm0 = vmmov 0   ;;  %v492_v1 = vmov 0.0   ;;  %v45_v2 = vld [vmem:[#allocation5] sm:$0xff] }
  0x27   :  { %354 = vmatprep.subr.bf16.mxu0 %v490_v0  ;;  %316 = vmatprep.mubr.msk.f32.mxu0 %vm491_vm0, %v492_v1  ;;  %v46_v3 = vld [vmem:[#allocation5 + $0x8] sm:$0xff]  ;;  %v47_v4 = vld [vmem:[#allocation5 + $0x10] sm:$0xff]  ;;  %v48_v6 = vld [vmem:[#allocation5 + $0x18] sm:$0xff]  ;;  %s493_s17 = smov [#allocation7]  }
  0x28   :  { %378 = vmatprep.subr.bf16.mxu1 %v490_v0  ;;  %351 = vmatprep.mubr.msk.f32.mxu1 %vm491_vm0, %v492_v1  ;;  %v355_v5 = vpack.c.bf16 %v46_v3, %v45_v2  ;;  %v358_v7 = vpack.c.bf16 %v48_v6, %v47_v4  ;;  %v49_v8 = vld [vmem:[#allocation5 + $0x20] sm:$0xff]  ;;  %v50_v9 = vld [vmem:[#allocation5 + $0x28] sm:$0xff]  ;;  %v51_v11 = vld [vmem:[#allocation5 + $0x30] sm:$0xff]  ;;  %s238_s18 = sshll.u32 %s493_s17, 4  ;;  %s239_s18 = int_to_ptr.vmem [resolvable:$true] %s238_s18 }
  0x29   :  { %v361_v10 = vpack.c.bf16 %v50_v9, %v49_v8  ;;  %v52_v12 = vld [vmem:[#allocation5 + $0x38] sm:$0xff]  ;;  %v53_v14 = vld [vmem:[#allocation5 + $0x40] sm:$0xff]  ;;  %v54_v15 = vld [vmem:[#allocation5 + $0x48] sm:$0xff]  ;;  %s458_s19 = scalar_lea.vmem %s239_s18, 64  ;;  %p463_p3 = scmp.lt.s32.totalorder %s239_s18, %s239_s18 }
  0x2a   :  { %356 = vmatpush3.bf16.msra.mxu0 %v355_v5  ;;  %380 = vmatpush3.bf16.msra.mxu1 %v355_v5  ;;  %v364_v13 = vpack.c.bf16 %v52_v12, %v51_v11  ;;  %v367_v16 = vpack.c.bf16 %v54_v15, %v53_v14  ;;  %v55_v17 = vld [vmem:[#allocation5 + $0x50] sm:$0xff]  ;;  %v56_v18 = vld [vmem:[#allocation5 + $0x58] sm:$0xff]  ;;  %v57_v20 = vld [vmem:[#allocation5 + $0x60] sm:$0xff]  ;;  %p459_p2 = scmp.ne.s32.totalorder %s239_s18, %s458_s19  ;;  %p464_p4 = scmp.lt.s32.totalorder %s458_s19, %s458_s19 }
  0x2b   :  { %357 = vmatprep.subr.bf16.mxu0 %v490_v0  ;;  %381 = vmatprep.subr.bf16.mxu1 %v490_v0  ;;  %v370_v19 = vpack.c.bf16 %v56_v18, %v55_v17  ;;  %v58_v21 = vld [vmem:[#allocation5 + $0x68] sm:$0xff]  ;;  %v59_v23 = vld [vmem:[#allocation5 + $0x70] sm:$0xff]  ;;  %v60_v24 = vld [vmem:[#allocation5 + $0x78] sm:$0xff] }
  0x2c   :  { %v373_v22 = vpack.c.bf16 %v58_v21, %v57_v20  ;;  %v376_v25 = vpack.c.bf16 %v60_v24, %v59_v23  ;;  %v44_v26 = vld [vmem:[#allocation2] sm:$0xf]  ;;  %p465_p5 = por %p464_p4, %p463_p3 }
  0x2d   :  { %v248_v42 = vld [vmem:[%s570_s2] ss:$0 sm:$0xff] }
  0x2e   :  { %359 = vmatpush3.bf16.msra.mxu0 %v358_v7  ;;  %383 = vmatpush3.bf16.msra.mxu1 %v358_v7  ;;  %v249_v44 = vld [vmem:[%s571_s3] ss:$0 sm:$0xff]  ;;  %p466_p6 = pnand %p465_p5, %p459_p2 }
  0x2f   :  { %360 = vmatprep.subr.bf16.mxu0 %v490_v0  ;;  %384 = vmatprep.subr.bf16.mxu1 %v490_v0 }
  0x32   :  { %362 = vmatpush3.bf16.msra.mxu0 %v361_v10  ;;  %386 = vmatpush3.bf16.msra.mxu1 %v361_v10 }
  0x33   :  { %363 = vmatprep.subr.bf16.mxu0 %v490_v0  ;;  %387 = vmatprep.subr.bf16.mxu1 %v490_v0 }
  0x36   :  { %365 = vmatpush3.bf16.msra.mxu0 %v364_v13  ;;  %389 = vmatpush3.bf16.msra.mxu1 %v364_v13 }
  0x37   :  { %366 = vmatprep.subr.bf16.mxu0 %v490_v0  ;;  %390 = vmatprep.subr.bf16.mxu1 %v490_v0 }
  0x3a   :  { %368 = vmatpush3.bf16.msra.mxu0 %v367_v16  ;;  %392 = vmatpush3.bf16.msra.mxu1 %v367_v16 }
  0x3b   :  { %369 = vmatprep.subr.bf16.mxu0 %v490_v0  ;;  %393 = vmatprep.subr.bf16.mxu1 %v490_v0 }
  0x3e   :  { %371 = vmatpush3.bf16.msra.mxu0 %v370_v19  ;;  %395 = vmatpush3.bf16.msra.mxu1 %v370_v19 }
  0x3f   :  { %372 = vmatprep.subr.bf16.mxu0 %v490_v0  ;;  %396 = vmatprep.subr.bf16.mxu1 %v490_v0 }
  0x42   :  { %374 = vmatpush3.bf16.msra.mxu0 %v373_v22  ;;  %398 = vmatpush3.bf16.msra.mxu1 %v373_v22 }
  0x43   :  { %375 = vmatprep.subr.bf16.mxu0 %v490_v0  ;;  %399 = vmatprep.subr.bf16.mxu1 %v490_v0 }
  0x46   :  { %377 = vmatpush3.bf16.msra.mxu0 %v376_v25  ;;  %401 = vmatpush3.bf16.msra.mxu1 %v376_v25 }
  0x49   :  { %317 = vmatmul.mubr.f32.vlgmr.msra.gmra.mrb[0].mxu0 %v44_v26 }
 0x11c   :  { %v127_v27 = vpop.f32.mrb[0].mxu0 }
 0x11d   :  { %v131_v28 = vmul.f32 0.03125, %v127_v27  ;;  %v318_v29 = vpop.f32.mrb[1].mxu0 }
 0x11f   :  { %v132_v30 = vsub.f32 %v44_v26, %v131_v28 }
 0x121   :  { %v133_v31 = vmul.f32 %v132_v30, %v132_v30 }
 0x123   :  { %352 = vmatmul.mubr.f32.vlgmr.msra.gmra.mrb[0].mxu1 %v133_v31 }
 0x1f6   :  { %v200_v32 = vpop.f32.mrb[0].mxu1 }
 0x1f7   :  { %v204_v33 = vmul.f32 0.032258064, %v200_v32  ;;  %v353_v34 = vpop.f32.mrb[1].mxu1 }
 0x1f9   :  { %410 = vrsqrt.f32 %v204_v33  ;;  %vm207_vm1 = vcmp.eq.f32.partialorder %v204_v33, inf  ;;  %v210_v37 = vand.u32 2147483648, %v204_v33  ;;  %vm209_vm2 = vcmp.eq.f32.partialorder %v204_v33, 0.0 }
 0x203   :  { %v411_v35 = vpop.eup %410 }
 0x204   :  { %v206_v36 = vmul.f32 %v411_v35, %v204_v33 }
 0x206   :  { %v208_v38 = vsel %vm207_vm1, %v204_v33, %v206_v36 }
 0x207   :  { %v211_v39 = vsel %vm209_vm2, %v210_v37, %v208_v38 }
 0x208   :  { %v212_v40 = vadd.f32 1e-06, %v211_v39 }
 0x20a   :  { %412 = vrcp.f32 %v212_v40 }
 0x214   :  { %v413_v41 = vpop.eup %412 }
 0x215   :  { %v216_v43 = vmul.f32 %v413_v41, %v132_v30 }
 0x217   :  { %v223_v45 = vmul.f32 %v248_v42, %v216_v43 }
 0x219   :  { %v230_v46 = vadd.f32 %v249_v44, %v223_v45 }
 0x21b   :  { %231 = vst [vmem:[#allocation7] sm:$0xf] %v230_v46 }
 0x21c   :  { %469 = shalt.err (!%p466_p6)
}
 0x21d   :  { %s470_s21 = scalar_lea.hbm %s572_s4, 64 }
 0x21e   :  { %p471_p7 = scmp.ne.s32.totalorder %s572_s4, %s470_s21  ;;  %p474_p8 = scmp.lt.u32.totalorder %s470_s21, %s572_s4 }
 0x220   :  { %p476_p9 = pnand %p474_p8, %p471_p7 }
 0x222   :  { %479 = shalt.err (!%p476_p9)
}
 0x223   :  { %241 = dma.vmem_to_hbm [thread:$0]  %s239_s18, 64, %s572_s4, [#allocation4]  }
 0x224   :  { %484 = dma.done.wait [#allocation4], 64  }
 0x225   :  { %485 = vsyncadd [#allocation4], 4294967232 }
 0x226   :  { %245 = vsyncpa [#allocation3], 1 }
 0x227   :  { %246 = vsyncpa [#allocation6], 1 }
 0x228   :  { %247 = vsyncpa [#allocation4], 1 }

</bundles_post_ra>
